<compile_context>
chip_gen: v5e
topology: v5e:2x2
jax: 0.10.0
libtpu: 0.0.40
codegen_flags: <defaults>
</compile_context>

<pallas_src>
import functools

import jax
import jax.numpy as jnp
from jax.experimental import pallas as pl
from jax.experimental.pallas import tpu as pltpu


def _round_up(x: int, m: int) -> int:
    return (x + m - 1) // m * m


def _make_fnn_kernel(n_layers: int, n_out: int):
    """Build the kernel, closing over static layer count / true output width."""

    def fnn_kernel(x_ref, *refs):
        # refs = [w0, b0, ..., w_{n_layers}, b_{n_layers}, logits_out, probs_out]
        n_params = 2 * (n_layers + 1)
        param_refs = refs[:n_params]
        logits_ref, probs_ref = refs[n_params:]

        h = x_ref[...].astype(jnp.float32)
        for li in range(n_layers + 1):
            w = param_refs[2 * li][...]          # bf16 (in, out): MXU-native operand
            b = param_refs[2 * li + 1][...]      # f32  (1, out)
            h = jnp.dot(h.astype(jnp.bfloat16), w,
                        preferred_element_type=jnp.float32) + b
            if li < n_layers:
                h = jnp.maximum(h, 0.0)          # ReLU; Dropout(0.5) identity in eval

        # Last layer is lane-padded to a 128 multiple (padded cols: W=0, b=-1e30),
        # so these stores are full-width / unmasked.
        logits_ref[...] = h

        if n_out == 1:
            probs_ref[...] = jax.nn.sigmoid(h)   # padded lanes -> sigmoid(-1e30) = 0
        else:
            m = jnp.max(h, axis=-1, keepdims=True)
            e = jnp.exp(h - m)                   # padded lanes -> exp(-huge) = 0
            s = jnp.sum(e, axis=-1, keepdims=True)
            probs_ref[...] = e * pl.reciprocal(s, approx=True)

    return fnn_kernel


class FNNPallas:
    """JAX/Pallas port of model/fnn.py::FNN (eval-mode forward)."""

    # Large batch tile keeps the skinny (K,N <= n_hiddens) matmuls MXU-filled and
    # amortizes the ~0.35us/grid-step overhead; small batches collapse to one tile.
    TILE_B_TARGET = 512

    def __init__(self, n_in, n_out, n_hiddens=500, n_layers=4, key=None):
        if key is None:
            key = jax.random.PRNGKey(0)
        self.n_in, self.n_out = n_in, n_out
        self.n_hiddens, self.n_layers = n_hiddens, n_layers
        self.n_out_pad = _round_up(n_out, 128)   # lane-dense output stores

        # PyTorch-style init: U(-1/sqrt(fan_in), 1/sqrt(fan_in)); weights stored
        # pre-transposed as (in, out) so the kernel computes h @ W + b directly.
        self.params = []                         # f32 reference copies (unpadded)
        fan = [(n_in if i == 0 else n_hiddens, n_hiddens) for i in range(n_layers)]
        fan.append((n_hiddens, n_out))
        for fin, fout in fan:
            key, kw, kb = jax.random.split(key, 3)
            bound = 1.0 / (fin ** 0.5)
            w = jax.random.uniform(kw, (fin, fout), jnp.float32, -bound, bound)
            b = jax.random.uniform(kb, (1, fout), jnp.float32, -bound, bound)
            self.params.append((w, b))

        # Kernel-side params: bf16 weights, f32 biases; final layer zero/-1e30
        # padded to n_out_pad lanes so softmax/sigmoid ignore the padding.
        flat = []
        for li, (w, b) in enumerate(self.params):
            if li == self.n_layers:
                w_p = jnp.zeros((w.shape[0], self.n_out_pad), jnp.float32)
                w = w_p.at[:, : self.n_out].set(w)
                b_p = jnp.full((1, self.n_out_pad), -1e30, jnp.float32)
                b = b_p.at[:, : self.n_out].set(b)
            flat.append(w.astype(jnp.bfloat16))
            flat.append(b.astype(jnp.float32))
        self.flat_kernel_params = tuple(flat)

    @functools.partial(jax.jit, static_argnums=0)
    def _run(self, x, flat_params):
        batch = x.shape[0]
        tile_b = min(self.TILE_B_TARGET, _round_up(batch, 8))
        padded_batch = _round_up(batch, tile_b)
        if padded_batch != batch:
            x = jnp.pad(x, ((0, padded_batch - batch), (0, 0)))

        kernel = _make_fnn_kernel(self.n_layers, self.n_out)

        x_spec = pl.BlockSpec((tile_b, self.n_in), lambda i: (i, 0))
        # Weights/biases: full-shape blocks with constant index_map -> VMEM-resident
        # across all batch tiles.
        param_specs = [pl.BlockSpec(p.shape, lambda i: (0, 0)) for p in flat_params]
        out_spec = pl.BlockSpec((tile_b, self.n_out_pad), lambda i: (i, 0))

        logits_pad, probs_pad = pl.pallas_call(
            kernel,
            grid=(padded_batch // tile_b,),
            out_shape=(
                jax.ShapeDtypeStruct((padded_batch, self.n_out_pad), jnp.float32),
                jax.ShapeDtypeStruct((padded_batch, self.n_out_pad), jnp.float32),
            ),
            in_specs=[x_spec] + param_specs,
            out_specs=(out_spec, out_spec),
            compiler_params=pltpu.CompilerParams(
                dimension_semantics=("parallel",),   # megacore sharding on v7x
            ),
        )(x, *flat_params)

        logits = logits_pad[:batch, : self.n_out]
        probs = probs_pad[:batch, : self.n_out]
        # 1-lane-wide reductions are cheaper as plain XLA ops than as masked
        # partial stores from the kernel.
        yh_top = jnp.argmax(logits, axis=-1)
        ph_top = jnp.max(probs, axis=-1)
        return logits, probs, yh_top, ph_top

    def __call__(self, x, training=False):
        # training=True would enable Dropout(0.5); eval-mode semantics implemented.
        # TODO(synk): stochastic dropout path (pltpu.prng_random_bits) not wired up.
        logits, probs, yh_top, ph_top = self._run(x, self.flat_kernel_params)
        return {"fh": logits, "ph": probs, "yh_top": yh_top, "ph_top": ph_top}


if __name__ == "__main__":
    key = jax.random.PRNGKey(0)
    k_x, k_p = jax.random.split(key)

    batch, n_in, n_hiddens, n_out = 8, 32, 64, 10
    x = jax.random.normal(k_x, (batch, n_in), jnp.float32)

    model = FNNPallas(n_in, n_out, n_hiddens=n_hiddens, n_layers=4, key=k_p)
    out = model(x)
    jax.block_until_ready(out)

    # Plain-JAX f32 reference (kernel matmuls run in bf16 -> loose tolerances).
    h = x
    for i, (w, b) in enumerate(model.params):
        h = h @ w + b
        if i < model.n_layers:
            h = jnp.maximum(h, 0.0)
    ref_logits = h
    ref_probs = jax.nn.softmax(ref_logits, -1)

    assert out["fh"].shape == (batch, n_out)
    assert out["ph"].shape == (batch, n_out)
    assert jnp.allclose(out["fh"], ref_logits, atol=3e-2, rtol=3e-2)
    assert jnp.allclose(out["ph"], ref_probs, atol=3e-2, rtol=3e-2)
    # Only check argmax on rows where the top-1 margin exceeds the bf16 noise floor.
    top2 = jnp.sort(ref_logits, axis=-1)[:, -2:]
    margin_ok = (top2[:, 1] - top2[:, 0]) > 1e-2
    assert jnp.all(~margin_ok | (out["yh_top"] == jnp.argmax(ref_logits, -1)))
    assert jnp.allclose(out["ph_top"], jnp.max(ref_probs, -1), atol=3e-2, rtol=3e-2)

    print("KERNEL_OK")
</pallas_src>

<mosaic_0001>
module attributes {stable_mosaic.version = 11 : i64} {
  func.func @fnn_kernel(%arg0: i32, %arg1: memref<8x32xf32, #tpu.memory_space<vmem>>, %arg2: memref<32x64xbf16, #tpu.memory_space<vmem>>, %arg3: memref<1x64xf32, #tpu.memory_space<vmem>>, %arg4: memref<64x64xbf16, #tpu.memory_space<vmem>>, %arg5: memref<1x64xf32, #tpu.memory_space<vmem>>, %arg6: memref<64x64xbf16, #tpu.memory_space<vmem>>, %arg7: memref<1x64xf32, #tpu.memory_space<vmem>>, %arg8: memref<64x64xbf16, #tpu.memory_space<vmem>>, %arg9: memref<1x64xf32, #tpu.memory_space<vmem>>, %arg10: memref<64x128xbf16, #tpu.memory_space<vmem>>, %arg11: memref<1x128xf32, #tpu.memory_space<vmem>>, %arg12: memref<8x128xf32, #tpu.memory_space<vmem>>, %arg13: memref<8x128xf32, #tpu.memory_space<vmem>>) attributes {dimension_semantics = [#tpu.dimension_semantics<parallel>], iteration_bounds = array<i64: 1>, scalar_prefetch = 0 : i64, scratch_operands = 0 : i64, tpu.core_type = #tpu.core_type<tc>, window_params = [{transform_indices = @transform_0, window_bounds = array<i64: 8, 32>}, {pipeline_mode = #tpu.pipeline_mode<synchronous>, transform_indices = @transform_1, window_bounds = array<i64: 32, 64>}, {pipeline_mode = #tpu.pipeline_mode<synchronous>, transform_indices = @transform_2, window_bounds = array<i64: 1, 64>}, {pipeline_mode = #tpu.pipeline_mode<synchronous>, transform_indices = @transform_3, window_bounds = array<i64: 64, 64>}, {pipeline_mode = #tpu.pipeline_mode<synchronous>, transform_indices = @transform_4, window_bounds = array<i64: 1, 64>}, {pipeline_mode = #tpu.pipeline_mode<synchronous>, transform_indices = @transform_5, window_bounds = array<i64: 64, 64>}, {pipeline_mode = #tpu.pipeline_mode<synchronous>, transform_indices = @transform_6, window_bounds = array<i64: 1, 64>}, {pipeline_mode = #tpu.pipeline_mode<synchronous>, transform_indices = @transform_7, window_bounds = array<i64: 64, 64>}, {pipeline_mode = #tpu.pipeline_mode<synchronous>, transform_indices = @transform_8, window_bounds = array<i64: 1, 64>}, {pipeline_mode = #tpu.pipeline_mode<synchronous>, transform_indices = @transform_9, window_bounds = array<i64: 64, 128>}, {pipeline_mode = #tpu.pipeline_mode<synchronous>, transform_indices = @transform_10, window_bounds = array<i64: 1, 128>}, {transform_indices = @transform_11, window_bounds = array<i64: 8, 128>}, {transform_indices = @transform_12, window_bounds = array<i64: 8, 128>}]} {
    %c0 = arith.constant 0 : index
    %c0_0 = arith.constant 0 : index
    %0 = vector.load %arg1[%c0, %c0_0] : memref<8x32xf32, #tpu.memory_space<vmem>>, vector<8x32xf32>
    %c0_1 = arith.constant 0 : index
    %c0_2 = arith.constant 0 : index
    %1 = vector.load %arg2[%c0_1, %c0_2] : memref<32x64xbf16, #tpu.memory_space<vmem>>, vector<32x64xbf16>
    %c0_3 = arith.constant 0 : index
    %c0_4 = arith.constant 0 : index
    %2 = vector.load %arg3[%c0_3, %c0_4] : memref<1x64xf32, #tpu.memory_space<vmem>>, vector<1x64xf32>
    %3 = arith.truncf %0 : vector<8x32xf32> to vector<8x32xbf16>
    %cst = arith.constant dense<0.000000e+00> : vector<8x64xf32>
    %4 = tpu.matmul %3, %1, %cst {dimension_numbers = #tpu.dot_dimension_numbers<[1], [0], [0], [1], [0, 0, 1, 1], [], []>} : vector<8x32xbf16>, vector<32x64xbf16>, vector<8x64xf32> -> vector<8x64xf32>
    %5 = vector.broadcast %2 : vector<1x64xf32> to vector<8x64xf32>
    %6 = arith.addf %4, %5 : vector<8x64xf32>
    %cst_5 = arith.constant 0.000000e+00 : f32
    %7 = vector.broadcast %cst_5 : f32 to vector<8x64xf32>
    %8 = arith.maximumf %6, %7 : vector<8x64xf32>
    %c0_6 = arith.constant 0 : index
    %c0_7 = arith.constant 0 : index
    %9 = vector.load %arg4[%c0_6, %c0_7] : memref<64x64xbf16, #tpu.memory_space<vmem>>, vector<64x64xbf16>
    %c0_8 = arith.constant 0 : index
    %c0_9 = arith.constant 0 : index
    %10 = vector.load %arg5[%c0_8, %c0_9] : memref<1x64xf32, #tpu.memory_space<vmem>>, vector<1x64xf32>
    %11 = arith.truncf %8 : vector<8x64xf32> to vector<8x64xbf16>
    %cst_10 = arith.constant dense<0.000000e+00> : vector<8x64xf32>
    %12 = tpu.matmul %11, %9, %cst_10 {dimension_numbers = #tpu.dot_dimension_numbers<[1], [0], [0], [1], [0, 0, 1, 1], [], []>} : vector<8x64xbf16>, vector<64x64xbf16>, vector<8x64xf32> -> vector<8x64xf32>
    %13 = vector.broadcast %10 : vector<1x64xf32> to vector<8x64xf32>
    %14 = arith.addf %12, %13 : vector<8x64xf32>
    %cst_11 = arith.constant 0.000000e+00 : f32
    %15 = vector.broadcast %cst_11 : f32 to vector<8x64xf32>
    %16 = arith.maximumf %14, %15 : vector<8x64xf32>
    %c0_12 = arith.constant 0 : index
    %c0_13 = arith.constant 0 : index
    %17 = vector.load %arg6[%c0_12, %c0_13] : memref<64x64xbf16, #tpu.memory_space<vmem>>, vector<64x64xbf16>
    %c0_14 = arith.constant 0 : index
    %c0_15 = arith.constant 0 : index
    %18 = vector.load %arg7[%c0_14, %c0_15] : memref<1x64xf32, #tpu.memory_space<vmem>>, vector<1x64xf32>
    %19 = arith.truncf %16 : vector<8x64xf32> to vector<8x64xbf16>
    %cst_16 = arith.constant dense<0.000000e+00> : vector<8x64xf32>
    %20 = tpu.matmul %19, %17, %cst_16 {dimension_numbers = #tpu.dot_dimension_numbers<[1], [0], [0], [1], [0, 0, 1, 1], [], []>} : vector<8x64xbf16>, vector<64x64xbf16>, vector<8x64xf32> -> vector<8x64xf32>
    %21 = vector.broadcast %18 : vector<1x64xf32> to vector<8x64xf32>
    %22 = arith.addf %20, %21 : vector<8x64xf32>
    %cst_17 = arith.constant 0.000000e+00 : f32
    %23 = vector.broadcast %cst_17 : f32 to vector<8x64xf32>
    %24 = arith.maximumf %22, %23 : vector<8x64xf32>
    %c0_18 = arith.constant 0 : index
    %c0_19 = arith.constant 0 : index
    %25 = vector.load %arg8[%c0_18, %c0_19] : memref<64x64xbf16, #tpu.memory_space<vmem>>, vector<64x64xbf16>
    %c0_20 = arith.constant 0 : index
    %c0_21 = arith.constant 0 : index
    %26 = vector.load %arg9[%c0_20, %c0_21] : memref<1x64xf32, #tpu.memory_space<vmem>>, vector<1x64xf32>
    %27 = arith.truncf %24 : vector<8x64xf32> to vector<8x64xbf16>
    %cst_22 = arith.constant dense<0.000000e+00> : vector<8x64xf32>
    %28 = tpu.matmul %27, %25, %cst_22 {dimension_numbers = #tpu.dot_dimension_numbers<[1], [0], [0], [1], [0, 0, 1, 1], [], []>} : vector<8x64xbf16>, vector<64x64xbf16>, vector<8x64xf32> -> vector<8x64xf32>
    %29 = vector.broadcast %26 : vector<1x64xf32> to vector<8x64xf32>
    %30 = arith.addf %28, %29 : vector<8x64xf32>
    %cst_23 = arith.constant 0.000000e+00 : f32
    %31 = vector.broadcast %cst_23 : f32 to vector<8x64xf32>
    %32 = arith.maximumf %30, %31 : vector<8x64xf32>
    %c0_24 = arith.constant 0 : index
    %c0_25 = arith.constant 0 : index
    %33 = vector.load %arg10[%c0_24, %c0_25] : memref<64x128xbf16, #tpu.memory_space<vmem>>, vector<64x128xbf16>
    %c0_26 = arith.constant 0 : index
    %c0_27 = arith.constant 0 : index
    %34 = vector.load %arg11[%c0_26, %c0_27] : memref<1x128xf32, #tpu.memory_space<vmem>>, vector<1x128xf32>
    %35 = arith.truncf %32 : vector<8x64xf32> to vector<8x64xbf16>
    %cst_28 = arith.constant dense<0.000000e+00> : vector<8x128xf32>
    %36 = tpu.matmul %35, %33, %cst_28 {dimension_numbers = #tpu.dot_dimension_numbers<[1], [0], [0], [1], [0, 0, 1, 1], [], []>} : vector<8x64xbf16>, vector<64x128xbf16>, vector<8x128xf32> -> vector<8x128xf32>
    %37 = vector.broadcast %34 : vector<1x128xf32> to vector<8x128xf32>
    %38 = arith.addf %36, %37 : vector<8x128xf32>
    %c0_29 = arith.constant 0 : index
    %c0_30 = arith.constant 0 : index
    %39 = vector.load %arg12[%c0_29, %c0_30] : memref<8x128xf32, #tpu.memory_space<vmem>>, vector<8x128xf32>
    tpu.vector_store %arg12[%c0_29, %c0_30], %38 {strides = array<i32>} : memref<8x128xf32, #tpu.memory_space<vmem>>, vector<8x128xf32>,
    %cst_31 = arith.constant dense<0xFF800000> : vector<8xf32>
    %40 = vector.multi_reduction <maximumf>, %38, %cst_31 [1] : vector<8x128xf32> to vector<8xf32>
    %41 = vector.shape_cast %40 : vector<8xf32> to vector<8x1xf32>
    %42 = vector.broadcast %41 : vector<8x1xf32> to vector<8x128xf32>
    %43 = arith.subf %38, %42 : vector<8x128xf32>
    %44 = math.exp %43 : vector<8x128xf32>
    %cst_32 = arith.constant dense<0.000000e+00> : vector<8xf32>
    %45 = vector.multi_reduction <add>, %44, %cst_32 [1] : vector<8x128xf32> to vector<8xf32>
    %46 = vector.shape_cast %45 : vector<8xf32> to vector<8x1xf32>
    %47 = tpu.reciprocal %46 {approx = true} : vector<8x1xf32> -> vector<8x1xf32>
    %48 = vector.broadcast %47 : vector<8x1xf32> to vector<8x128xf32>
    %49 = arith.mulf %44, %48 : vector<8x128xf32>
    %c0_33 = arith.constant 0 : index
    %c0_34 = arith.constant 0 : index
    %50 = vector.load %arg13[%c0_33, %c0_34] : memref<8x128xf32, #tpu.memory_space<vmem>>, vector<8x128xf32>
    tpu.vector_store %arg13[%c0_33, %c0_34], %49 {strides = array<i32>} : memref<8x128xf32, #tpu.memory_space<vmem>>, vector<8x128xf32>,
    return
  }
  func.func @transform_0(%arg0: i32) -> (i32, i32) {
    %c0_i32 = arith.constant 0 : i32
    %c0_i32_0 = arith.constant 0 : i32
    return %arg0, %c0_i32 : i32, i32
  }
  func.func @transform_1(%arg0: i32) -> (i32, i32) {
    %c0_i32 = arith.constant 0 : i32
    %c0_i32_0 = arith.constant 0 : i32
    %c0_i32_1 = arith.constant 0 : i32
    return %c0_i32, %c0_i32_0 : i32, i32
  }
  func.func @transform_2(%arg0: i32) -> (i32, i32) {
    %c0_i32 = arith.constant 0 : i32
    %c0_i32_0 = arith.constant 0 : i32
    %c0_i32_1 = arith.constant 0 : i32
    return %c0_i32, %c0_i32_0 : i32, i32
  }
  func.func @transform_3(%arg0: i32) -> (i32, i32) {
    %c0_i32 = arith.constant 0 : i32
    %c0_i32_0 = arith.constant 0 : i32
    %c0_i32_1 = arith.constant 0 : i32
    return %c0_i32, %c0_i32_0 : i32, i32
  }
  func.func @transform_4(%arg0: i32) -> (i32, i32) {
    %c0_i32 = arith.constant 0 : i32
    %c0_i32_0 = arith.constant 0 : i32
    %c0_i32_1 = arith.constant 0 : i32
    return %c0_i32, %c0_i32_0 : i32, i32
  }
  func.func @transform_5(%arg0: i32) -> (i32, i32) {
    %c0_i32 = arith.constant 0 : i32
    %c0_i32_0 = arith.constant 0 : i32
    %c0_i32_1 = arith.constant 0 : i32
    return %c0_i32, %c0_i32_0 : i32, i32
  }
  func.func @transform_6(%arg0: i32) -> (i32, i32) {
    %c0_i32 = arith.constant 0 : i32
    %c0_i32_0 = arith.constant 0 : i32
    %c0_i32_1 = arith.constant 0 : i32
    return %c0_i32, %c0_i32_0 : i32, i32
  }
  func.func @transform_7(%arg0: i32) -> (i32, i32) {
    %c0_i32 = arith.constant 0 : i32
    %c0_i32_0 = arith.constant 0 : i32
    %c0_i32_1 = arith.constant 0 : i32
    return %c0_i32, %c0_i32_0 : i32, i32
  }
  func.func @transform_8(%arg0: i32) -> (i32, i32) {
    %c0_i32 = arith.constant 0 : i32
    %c0_i32_0 = arith.constant 0 : i32
    %c0_i32_1 = arith.constant 0 : i32
    return %c0_i32, %c0_i32_0 : i32, i32
  }
  func.func @transform_9(%arg0: i32) -> (i32, i32) {
    %c0_i32 = arith.constant 0 : i32
    %c0_i32_0 = arith.constant 0 : i32
    %c0_i32_1 = arith.constant 0 : i32
    return %c0_i32, %c0_i32_0 : i32, i32
  }
  func.func @transform_10(%arg0: i32) -> (i32, i32) {
    %c0_i32 = arith.constant 0 : i32
    %c0_i32_0 = arith.constant 0 : i32
    %c0_i32_1 = arith.constant 0 : i32
    return %c0_i32, %c0_i32_0 : i32, i32
  }
  func.func @transform_11(%arg0: i32) -> (i32, i32) {
    %c0_i32 = arith.constant 0 : i32
    %c0_i32_0 = arith.constant 0 : i32
    return %arg0, %c0_i32 : i32, i32
  }
  func.func @transform_12(%arg0: i32) -> (i32, i32) {
    %c0_i32 = arith.constant 0 : i32
    %c0_i32_0 = arith.constant 0 : i32
    return %arg0, %c0_i32 : i32, i32
  }
}

</mosaic_0001>

<bundles_post_ra>
// kernel: _run.1
= control target key start
LH: loop header
LB: loop body
LE: loop exit
PB: predicated region body
PF: predicated region fallthrough
CT: control target
= control target key end

     0   :  { %18 = vsyncpa [#allocation3], 0  ;;  %s807_s0 = inlined_call_operand.hbm [shape: f32[8,32], index: 0, kind: input, shape index: {}]   ;;  %s808_s1 = inlined_call_operand.hbm [shape: bf16[32,64], index: 1, kind: input, shape index: {}]   ;;  %s809_s2 = inlined_call_operand.vmem [shape: f32[1,64], index: 2, kind: input, shape index: {}]   ;;  %s810_s3 = inlined_call_operand.hbm [shape: bf16[64,64], index: 3, kind: input, shape index: {}]   ;;  %s811_s4 = inlined_call_operand.vmem [shape: f32[1,64], index: 4, kind: input, shape index: {}]   ;;  %s812_s5 = inlined_call_operand.hbm [shape: bf16[64,64], index: 5, kind: input, shape index: {}]   ;;  %s813_s6 = inlined_call_operand.vmem [shape: f32[1,64], index: 6, kind: input, shape index: {}]   ;;  %s814_s7 = inlined_call_operand.hbm [shape: bf16[64,64], index: 7, kind: input, shape index: {}]   ;;  %s815_s8 = inlined_call_operand.vmem [shape: f32[1,64], index: 8, kind: input, shape index: {}]   ;;  %s816_s9 = inlined_call_operand.hbm [shape: bf16[64,128], index: 9, kind: input, shape index: {}]   ;;  %s817_s10 = inlined_call_operand.vmem [shape: f32[1,128], index: 10, kind: input, shape index: {}]   ;;  %s818_s11 = inlined_call_operand.vmem [shape: f32[8,128], index: 11, kind: output, shape index: {0}]   ;;  %s819_s12 = inlined_call_operand.vmem [shape: f32[8,128], index: 12, kind: output, shape index: {1}]  }
   0x1   :  { %19 = vsyncpa [#allocation5], 0 }
   0x2   :  { %20 = vsyncpa [#allocation8], 0  ;;  %s37_s23 = sshll.u32 %s808_s1, 4  ;;  %s38_s23 = int_to_ptr.hbm [resolvable:$true] %s37_s23 }
   0x3   :  { %21 = vsyncpa [#allocation11], 0  ;;  %s676_s24 = smov [#allocation4]   ;;  %s67_s28 = sshll.u32 %s812_s5, 4  ;;  %s68_s28 = int_to_ptr.hbm [resolvable:$true] %s67_s28 }
   0x4   :  { %s39_s25 = sshll.u32 %s676_s24, 4  ;;  %s677_s29 = smov 64   ;;  %s40_s25 = int_to_ptr.vmem [resolvable:$true] %s39_s25 }
   0x5   :  { %s678_s30 = smov 4   ;;  %s679_s13 = smov [#allocation7]  }
   0x6   :  { %45 = dma.hbm_to_vmem [thread:$0]  %s38_s23, 256, %s40_s25, [#allocation5], %s677_s29, %s677_s29, %s678_s30  }
   0x7   :  { %s69_s14 = sshll.u32 %s679_s13, 4  ;;  %s27_s16 = sshll.u32 %s807_s0, 4  ;;  %s70_s14 = int_to_ptr.vmem [resolvable:$true] %s69_s14  ;;  %s28_s16 = int_to_ptr.hbm [resolvable:$true] %s27_s16 }
   0x8   :  { %75 = dma.hbm_to_vmem [thread:$0]  %s68_s28, 512, %s70_s14, [#allocation8], %s677_s29, %s677_s29, %s678_s30  }
   0x9   :  { %s52_s18 = sshll.u32 %s810_s3, 4  ;;  %s680_s19 = smov [#allocation2]   ;;  %s53_s18 = int_to_ptr.hbm [resolvable:$true] %s52_s18 }
   0xa   :  { %s29_s20 = sshll.u32 %s680_s19, 4  ;;  %s681_s21 = smov [#allocation6]   ;;  %s30_s20 = int_to_ptr.vmem [resolvable:$true] %s29_s20 }
   0xb   :  { %32 = dma.hbm_to_vmem [thread:$0]  %s28_s16, 128, %s30_s20, [#allocation3]  }
   0xc   :  { %s54_s22 = sshll.u32 %s681_s21, 4  ;;  %s82_s0 = sshll.u32 %s814_s7, 4  ;;  %s55_s22 = int_to_ptr.vmem [resolvable:$true] %s54_s22  ;;  %s83_s0 = int_to_ptr.hbm [resolvable:$true] %s82_s0 }
   0xd   :  { %60 = dma.hbm_to_vmem [thread:$0]  %s53_s18, 512, %s55_s22, [#allocation5], %s677_s29, %s677_s29, %s678_s30  }
   0xe   :  { %s97_s3 = sshll.u32 %s816_s9, 4  ;;  %s682_s27 = smov [#allocation9]   ;;  %s98_s3 = int_to_ptr.hbm [resolvable:$true] %s97_s3 }
   0xf   :  { %s84_s28 = sshll.u32 %s682_s27, 4  ;;  %s683_s13 = smov [#allocation10]   ;;  %s85_s28 = int_to_ptr.vmem [resolvable:$true] %s84_s28 }
  0x10   :  { %90 = dma.hbm_to_vmem [thread:$0]  %s83_s0, 512, %s85_s28, [#allocation8], %s677_s29, %s677_s29, %s678_s30  }
  0x11   :  { %s99_s7 = sshll.u32 %s683_s13, 4  ;;  %s100_s7 = int_to_ptr.vmem [resolvable:$true] %s99_s7 }
  0x12   :  { %105 = dma.hbm_to_vmem [thread:$0]  %s98_s3, 512, %s100_s7, [#allocation11], %s677_s29, %s677_s29, %s678_s30  }
  0x13   :  { %668 = dma.done.wait [#allocation3], 128  }
  0x14   :  { %669 = vsyncadd [#allocation3], 4294967168 }
  0x15   :  { %670 = dma.done.wait [#allocation5], 768  }
  0x16   :  { %671 = vsyncadd [#allocation5], 4294966528 }
  0x17   :  { %672 = dma.done.wait [#allocation8], 1024  }
  0x18   :  { %673 = vsyncadd [#allocation8], 4294966272 }
  0x19   :  { %674 = dma.done.wait [#allocation11], 512  }
  0x1a   :  { %675 = vsyncadd [#allocation11], 4294966784  ;;  %v490_v0 = vld [vmem:[#allocation4 + $0x8] sm:$0xff]  ;;  %v489_v1 = vld [vmem:[#allocation4] sm:$0xff]  ;;  %vm155_vm0 = vcmask 261120   ;;  %vm210_vm1 = vcmask 523264  }
  0x1b   :  { %v494_v2 = vld [vmem:[#allocation6 + $0x18] sm:$0xff]  ;;  %165 = vmatpush.bf16.msra.mxu0 %v490_v0  ;;  %v133_v3 = vld [vmem:[#allocation2] sm:$0xff]  ;;  %v493_v4 = vld [vmem:[#allocation6 + $0x10] sm:$0xff] }
  0x1c   :  { %218 = vmatpush.bf16.msra.mxu1 %v494_v2  ;;  %v139_v5 = vpack.c.bf16 %v133_v3, %v133_v3  ;;  %v492_v6 = vld [vmem:[#allocation6 + $0x8] sm:$0xff]  ;;  %v491_v7 = vld [vmem:[#allocation6] sm:$0xff]  ;;  %v498_v8 = vld [vmem:[#allocation7 + $0x18] sm:$0xff] }
  0x1d   :  { %272 = vmatpush.bf16.msra.mxu2 %v498_v8  ;;  %v497_v9 = vld [vmem:[#allocation7 + $0x10] sm:$0xff]  ;;  %v515_v10 = vld [vmem:[%s809_s2] ss:$0 sm:$0xff]  ;;  %v495_v17 = vld [vmem:[#allocation7] sm:$0xff] }
  0x1e   :  { %v496_v16 = vld [vmem:[#allocation7 + $0x8] sm:$0xff]  ;;  %v502_v18 = vld [vmem:[#allocation9 + $0x18] sm:$0xff]  ;;  %v501_v19 = vld [vmem:[#allocation9 + $0x10] sm:$0xff] }
  0x1f   :  { %166 = vmatpush.bf16.msra.mxu0 %v489_v1  ;;  %326 = vmatpush.bf16.msra.mxu3 %v502_v18  ;;  %v516_v20 = vld [vmem:[%s811_s4] ss:$0 sm:$0xff]  ;;  %v499_v27 = vld [vmem:[#allocation9] sm:$0xff]  ;;  %v506_v28 = vld [vmem:[#allocation10 + $0x18] sm:$0xff] }
  0x20   :  { %219 = vmatpush.bf16.msra.mxu1 %v493_v4  ;;  %v500_v26 = vld [vmem:[#allocation9 + $0x8] sm:$0xff]  ;;  %v505_v29 = vld [vmem:[#allocation10 + $0x10] sm:$0xff]  ;;  %v503_v37 = vld [vmem:[#allocation10] sm:$0xff] }
  0x21   :  { %273 = vmatpush.bf16.msra.mxu2 %v497_v9  ;;  %v504_v30 = vld [vmem:[#allocation10 + $0x8] sm:$0xff] }
  0x22   :  { %420 = vmatmul.msk.bf16.vlgmr.msra.gmra.mxu0 %vm155_vm0, %v139_v5  ;;  %v517_v31 = vld [vmem:[%s813_s6] ss:$0 sm:$0xff] }
  0x23   :  { %327 = vmatpush.bf16.msra.mxu3 %v501_v19  ;;  %380 = vmatpush.bf16.msrb.mxu0 %v506_v28  ;;  %v518_v38 = vld [vmem:[%s815_s8] ss:$0 sm:$0xff] }
  0x24   :  { %220 = vmatpush.bf16.msra.mxu1 %v492_v6  ;;  %v519_v44 = vld [vmem:[%s817_s10] ss:$0 sm:$0xff] }
  0x25   :  { %274 = vmatpush.bf16.msra.mxu2 %v496_v16 }
  0x27   :  { %328 = vmatpush.bf16.msra.mxu3 %v500_v26  ;;  %381 = vmatpush.bf16.msrb.mxu0 %v505_v29 }
  0x28   :  { %221 = vmatpush.bf16.msra.mxu1 %v491_v7 }
  0x29   :  { %275 = vmatpush.bf16.msra.mxu2 %v495_v17 }
  0x2b   :  { %329 = vmatpush.bf16.msra.mxu3 %v499_v27  ;;  %382 = vmatpush.bf16.msrb.mxu0 %v504_v30 }
  0x2f   :  { %383 = vmatpush.bf16.msrb.mxu0 %v503_v37 }
  0x9f   :  { %v168_v11 = vpop.f32.mrf.mxu0 }
  0xa0   :  { %v169_v12 = vadd.f32 %v515_v10, %v168_v11 }
  0xa2   :  { %v172_v13 = vmax.f32 %v169_v12, 0.0 }
  0xa4   :  { %v182_v14 = vpack.c.bf16 %v172_v13, %v172_v13 }
  0xa6   :  { %437 = vmatmul.msk.bf16.vlgmr.msra.gmra.mxu1 %vm210_vm1, %v182_v14 }
  0xa7   :  { %v170_v15 = vpop.f32.mrf.mxu0 }
 0x123   :  { %v223_v21 = vpop.f32.mrf.mxu1 }
 0x124   :  { %v224_v22 = vadd.f32 %v516_v20, %v223_v21 }
 0x126   :  { %v227_v23 = vmax.f32 %v224_v22, 0.0 }
 0x128   :  { %v237_v24 = vpack.c.bf16 %v227_v23, %v227_v23 }
 0x12a   :  { %454 = vmatmul.msk.bf16.vlgmr.msra.gmra.mxu2 %vm210_vm1, %v237_v24 }
 0x12b   :  { %v225_v25 = vpop.f32.mrf.mxu1 }
 0x1ad   :  { %v277_v32 = vpop.f32.mrf.mxu2 }
 0x1ae   :  { %v278_v33 = vadd.f32 %v517_v31, %v277_v32 }
 0x1b0   :  { %v281_v34 = vmax.f32 %v278_v33, 0.0 }
 0x1b2   :  { %v291_v35 = vpack.c.bf16 %v281_v34, %v281_v34 }
 0x1b4   :  { %471 = vmatmul.msk.bf16.vlgmr.msra.gmra.mxu3 %vm210_vm1, %v291_v35 }
 0x1b5   :  { %v279_v36 = vpop.f32.mrf.mxu2 }
 0x237   :  { %v331_v39 = vpop.f32.mrf.mxu3 }
 0x238   :  { %v332_v40 = vadd.f32 %v518_v38, %v331_v39 }
 0x23a   :  { %v335_v41 = vmax.f32 %v332_v40, 0.0 }
 0x23c   :  { %v345_v42 = vpack.c.bf16 %v335_v41, %v335_v41 }
 0x23e   :  { %488 = vmatmul.msk.bf16.vlgmr.msrb.gmra.mxu0 %vm210_vm1, %v345_v42 }
 0x23f   :  { %v333_v43 = vpop.f32.mrf.mxu3 }
 0x2bb   :  { %v385_v45 = vpop.f32.mrf.mxu0 }
 0x2bc   :  { %v386_v46 = vadd.f32 %v519_v44, %v385_v45 }
 0x2be   :  { %389 = vst [vmem:[%s818_s11] sm:$0xff] %v386_v46  ;;  %390 = vmax.xlane.f32.xlu0 %v386_v46 }
 0x2c3   :  { %v387_v47 = vpop.f32.mrf.mxu0 }
 0x331   :  { %v391_v48 = vpop.xlane.xlu0 %390 }
 0x332   :  { %v392_v49 = vsub.f32 %v386_v46, %v391_v48 }
 0x334   :  { %v393_v50 = vmul.f32 1.442695, %v392_v49 }
 0x336   :  { %520 = vpow2.f32 %v393_v50 }
 0x33c   :  { %v521_v51 = vpop.eup %520 }
 0x33d   :  { %395 = vadd.xlane.f32.xlu0 %v521_v51 }
 0x3b0   :  { %v396_v52 = vpop.xlane.xlu0 %395 }
 0x3b1   :  { %522 = vrcp.f32 %v396_v52 }
 0x3b7   :  { %v523_v53 = vpop.eup %522 }
 0x3b8   :  { %v398_v54 = vmul.f32 %v523_v53, %v521_v51 }
 0x3ba   :  { %399 = vst [vmem:[%s819_s12] sm:$0xff] %v398_v54 }
 0x3bb   :  { %408 = vsyncpa [#allocation3], 1 }
 0x3bc   :  { %409 = vsyncpa [#allocation5], 1 }
 0x3bd   :  { %410 = vsyncpa [#allocation8], 1 }
 0x3be   :  { %411 = vsyncpa [#allocation11], 1 }

</bundles_post_ra>
